<compile_context>
chip_gen: v5e
topology: v5e:2x2
jax: 0.10.0
libtpu: 0.0.40
codegen_flags: <defaults>
</compile_context>

<pallas_src>
import math
import functools

import jax
import jax.numpy as jnp
from jax.experimental import pallas as pl
from jax.experimental.pallas import tpu as pltpu


# ----------------------------------------------------------------------------
# Parameter / buffer setup (deterministic, mirrors nn.Module.__init__)
# ----------------------------------------------------------------------------
def make_positional_encoding_table(d_model: int, max_len: int = 5000) -> jnp.ndarray:
    """Builds pe of shape (max_len, 1, d_model), exactly like the PyTorch buffer."""
    position = jnp.arange(0, max_len, dtype=jnp.float32)[:, None]          # (L, 1)
    div_term = jnp.exp(
        jnp.arange(0, d_model, 2, dtype=jnp.float32) * (-math.log(10000.0) / d_model)
    )                                                                       # (D/2,)
    angles = position * div_term                                            # (L, D/2)
    pe = jnp.zeros((max_len, d_model), dtype=jnp.float32)
    pe = pe.at[:, 0::2].set(jnp.sin(angles))
    pe = pe.at[:, 1::2].set(jnp.cos(angles))
    # unsqueeze(0).transpose(0, 1) -> (max_len, 1, d_model)
    return pe[:, None, :]


# ----------------------------------------------------------------------------
# Pallas kernels (operate on lane-dense 2-D tiles)
# ----------------------------------------------------------------------------
def _pe_add_kernel(x_ref, pe_ref, o_ref, *, batch):
    # x_ref: (tS, B*D), pe_ref: (tS, D). Expand pe across batch in the lane dim.
    pe = jnp.tile(pe_ref[...], (1, batch))                 # (tS, B*D)
    o_ref[...] = (x_ref[...] + pe).astype(o_ref.dtype)


def _pe_add_dropout_kernel(x_ref, pe_ref, bits_ref, o_ref, *, batch, threshold, scale):
    # Inverted dropout: keep iff raw uint32 bits >= threshold (keep prob = 1 - p).
    pe = jnp.tile(pe_ref[...], (1, batch))                 # (tS, B*D)
    y = x_ref[...] + pe
    keep = bits_ref[...] >= jnp.uint32(threshold)
    o_ref[...] = jnp.where(keep, y * scale, jnp.zeros_like(y)).astype(o_ref.dtype)


# ----------------------------------------------------------------------------
# Wrapper
# ----------------------------------------------------------------------------
def _round_up(n: int, m: int) -> int:
    return ((n + m - 1) // m) * m


def _choose_seq_tile(S: int, row_bytes: int, budget_bytes: int = 12 << 20) -> int:
    """Largest multiple-of-8 seq tile whose double-buffered set fits the budget."""
    t = (budget_bytes // (2 * row_bytes)) // 8 * 8
    t = max(8, t)
    return min(t, _round_up(S, 8))


def positional_encoding_forward(x, pe, *, dropout_p=0.1, training=False,
                                rng_key=None, seq_tile=None):
    """x: (S, B, D); pe: (max_len, 1, D) float32. Returns (S, B, D) in x.dtype."""
    S, B, D = x.shape
    itemsize = jnp.dtype(x.dtype).itemsize

    # Lane-dense 2-D views (row-major reshape is free).
    x2 = x.reshape(S, B * D)
    pe2 = pe[:S, 0, :].astype(x.dtype)                     # (S, D), matches x dtype

    use_dropout = training and dropout_p > 0.0

    # Per-row byte footprint of one grid step (x tile + out tile + pe tile [+ bits]).
    row_bytes = 2 * (B * D) * itemsize + D * itemsize
    if use_dropout:
        row_bytes += (B * D) * 4                           # uint32 mask bits
    tS = _choose_seq_tile(S, row_bytes) if seq_tile is None else seq_tile
    grid = (pl.cdiv(S, tS),)                               # ragged last tile is masked

    x_spec = pl.BlockSpec((tS, B * D), lambda i: (i, 0))
    pe_spec = pl.BlockSpec((tS, D), lambda i: (i, 0))
    out_spec = pl.BlockSpec((tS, B * D), lambda i: (i, 0))
    out_shape = jax.ShapeDtypeStruct((S, B * D), x.dtype)
    cparams = pltpu.CompilerParams(dimension_semantics=("parallel",))

    if not use_dropout:
        # Eval mode (or p == 0): nn.Dropout is identity.
        out2 = pl.pallas_call(
            functools.partial(_pe_add_kernel, batch=B),
            out_shape=out_shape,
            grid=grid,
            in_specs=[x_spec, pe_spec],
            out_specs=out_spec,
            compiler_params=cparams,
        )(x2, pe2)
        return out2.reshape(S, B, D)

    # Training mode: inverted dropout. Mask bits come from jax.random (portable,
    # unlike the on-chip PRNG which does not lower in CPU interpret mode).
    # TODO(synk): exact PyTorch RNG stream cannot be reproduced; semantics match.
    if rng_key is None:
        rng_key = jax.random.PRNGKey(0)
    bits = jax.random.bits(rng_key, (S, B * D), dtype=jnp.uint32)
    threshold = min(int(round(float(dropout_p) * (1 << 32))), (1 << 32) - 1)
    scale = 1.0 / (1.0 - float(dropout_p))

    bits_spec = pl.BlockSpec((tS, B * D), lambda i: (i, 0))
    out2 = pl.pallas_call(
        functools.partial(_pe_add_dropout_kernel, batch=B,
                          threshold=threshold, scale=scale),
        out_shape=out_shape,
        grid=grid,
        in_specs=[x_spec, pe_spec, bits_spec],
        out_specs=out_spec,
        compiler_params=cparams,
    )(x2, pe2, bits)
    return out2.reshape(S, B, D)


# ----------------------------------------------------------------------------
# Demo / self-test
# ----------------------------------------------------------------------------
if __name__ == "__main__":
    d_model = 32
    max_len = 5000
    S, B = 8, 2

    key = jax.random.PRNGKey(0)
    x = jax.random.normal(key, (S, B, d_model), dtype=jnp.float32)

    pe = make_positional_encoding_table(d_model, max_len)

    # Eval-mode forward (dropout = identity): must match reference exactly.
    out = positional_encoding_forward(x, pe, dropout_p=0.1, training=False)
    out = jax.block_until_ready(out)

    ref = x + pe[:S]
    assert out.shape == (S, B, d_model)
    assert jnp.allclose(out, ref, atol=1e-6, rtol=1e-6), "mismatch vs reference"

    # Training-mode forward (stochastic inverted dropout) — exercise the kernel.
    drop_key = jax.random.PRNGKey(123)
    out_train = positional_encoding_forward(
        x, pe, dropout_p=0.1, training=True, rng_key=drop_key)
    out_train = jax.block_until_ready(out_train)
    # Every surviving element equals ref * 1/(1-p); dropped elements are 0.
    scaled = ref / (1.0 - 0.1)
    ok = jnp.logical_or(jnp.isclose(out_train, 0.0),
                        jnp.isclose(out_train, scaled, atol=1e-5, rtol=1e-5))
    assert bool(jnp.all(ok)), "dropout semantics mismatch"

    print("KERNEL_OK")
</pallas_src>

<mosaic_0001>
module attributes {stable_mosaic.version = 11 : i64} {
  func.func @_pe_add_kernel(%arg0: i32, %arg1: memref<8x64xf32, #tpu.memory_space<vmem>>, %arg2: memref<8x32xf32, #tpu.memory_space<vmem>>, %arg3: memref<8x64xf32, #tpu.memory_space<vmem>>) attributes {dimension_semantics = [#tpu.dimension_semantics<parallel>], iteration_bounds = array<i64: 1>, scalar_prefetch = 0 : i64, scratch_operands = 0 : i64, tpu.core_type = #tpu.core_type<tc>, window_params = [{transform_indices = @transform_0, window_bounds = array<i64: 8, 64>}, {transform_indices = @transform_1, window_bounds = array<i64: 8, 32>}, {transform_indices = @transform_2, window_bounds = array<i64: 8, 64>}]} {
    %c0 = arith.constant 0 : index
    %c0_0 = arith.constant 0 : index
    %0 = vector.load %arg2[%c0, %c0_0] : memref<8x32xf32, #tpu.memory_space<vmem>>, vector<8x32xf32>
    %1 = tpu.concatenate %0, %0 in 1 : vector<8x32xf32>, vector<8x32xf32> -> vector<8x64xf32>
    %c0_1 = arith.constant 0 : index
    %c0_2 = arith.constant 0 : index
    %2 = vector.load %arg1[%c0_1, %c0_2] : memref<8x64xf32, #tpu.memory_space<vmem>>, vector<8x64xf32>
    %3 = arith.addf %2, %1 : vector<8x64xf32>
    %c0_3 = arith.constant 0 : index
    %c0_4 = arith.constant 0 : index
    %4 = vector.load %arg3[%c0_3, %c0_4] : memref<8x64xf32, #tpu.memory_space<vmem>>, vector<8x64xf32>
    tpu.vector_store %arg3[%c0_3, %c0_4], %3 {strides = array<i32>} : memref<8x64xf32, #tpu.memory_space<vmem>>, vector<8x64xf32>,
    return
  }
  func.func @transform_0(%arg0: i32) -> (i32, i32) {
    %c0_i32 = arith.constant 0 : i32
    %c0_i32_0 = arith.constant 0 : i32
    return %arg0, %c0_i32 : i32, i32
  }
  func.func @transform_1(%arg0: i32) -> (i32, i32) {
    %c0_i32 = arith.constant 0 : i32
    %c0_i32_0 = arith.constant 0 : i32
    return %arg0, %c0_i32 : i32, i32
  }
  func.func @transform_2(%arg0: i32) -> (i32, i32) {
    %c0_i32 = arith.constant 0 : i32
    %c0_i32_0 = arith.constant 0 : i32
    return %arg0, %c0_i32 : i32, i32
  }
}

</mosaic_0001>

<bundles_post_ra>
// kernel: tpu_custom_call.1
= control target key start
LH: loop header
LB: loop body
LE: loop exit
PB: predicated region body
PF: predicated region fallthrough
CT: control target
= control target key end

     0   :  { %7 = vsyncpa [#allocation3], 0  ;;  %s179_s0 = inlined_call_operand.hbm [shape: f32[8,64], index: 0, kind: input, shape index: {}]   ;;  %s180_s1 = inlined_call_operand.hbm [shape: f32[8,32], index: 1, kind: input, shape index: {}]   ;;  %s181_s2 = inlined_call_operand.hbm [shape: f32[8,64], index: 2, kind: output, shape index: {}]  }
   0x1   :  { %8 = vsyncpa [#allocation6], 0 }
   0x2   :  { %9 = vsyncpa [#allocation4], 0  ;;  %s15_s11 = sshll.u32 %s179_s0, 4  ;;  %s151_s12 = smov [#allocation2]   ;;  %s16_s11 = int_to_ptr.hbm [resolvable:$true] %s15_s11 }
   0x3   :  { %s17_s13 = sshll.u32 %s151_s12, 4  ;;  %s26_s16 = sshll.u32 %s180_s1, 4  ;;  %s18_s13 = int_to_ptr.vmem [resolvable:$true] %s17_s13  ;;  %s27_s16 = int_to_ptr.hbm [resolvable:$true] %s26_s16 }
   0x4   :  { %20 = dma.hbm_to_vmem [thread:$0]  %s16_s11, 128, %s18_s13, [#allocation3]  }
   0x5   :  { %s152_s17 = smov [#allocation5]  }
   0x6   :  { %s28_s18 = sshll.u32 %s152_s17, 4  ;;  %s29_s18 = int_to_ptr.vmem [resolvable:$true] %s28_s18 }
   0x7   :  { %31 = dma.hbm_to_vmem [thread:$0]  %s27_s16, 128, %s29_s18, [#allocation6]  }
   0x8   :  { %145 = dma.done.wait [#allocation3], 128  }
   0x9   :  { %146 = vsyncadd [#allocation3], 4294967168 }
   0xa   :  { %147 = dma.done.wait [#allocation6], 128  }
   0xb   :  { %148 = vsyncadd [#allocation6], 4294967168  ;;  %v40_v0 = vld [vmem:[#allocation5] sm:$0xff]  ;;  %s153_s0 = smov 32   ;;  %vm45_vm0 = vcmask 261120   ;;  %v47_v1 = vld [vmem:[#allocation2] sm:$0xff] }
   0xc   :  { %42 = vrot.lane.b32.xlu0 %v40_v0, %s153_s0  ;;  %s154_s19 = smov [#allocation7]   ;;  %s58_s1 = sshll.u32 %s181_s2, 4  ;;  %vm49_vm1 = vcmask 523264   ;;  %s59_s1 = int_to_ptr.hbm [resolvable:$true] %s58_s1 }
   0xd   :  { %s56_s20 = sshll.u32 %s154_s19, 4  ;;  %s57_s20 = int_to_ptr.vmem [resolvable:$true] %s56_s20 }
  0x7e   :  { %v43_v2 = vpop.permute.xlu0 %42 }
  0x7f   :  { %v46_v3 = vsel %vm45_vm0, %v40_v0, %v43_v2 }
  0x80   :  { %v48_v4 = vadd.f32 %v47_v1, %v46_v3 }
  0x82   :  { %50 = vst.msk [vmem:[#allocation7] sm:$0xff] %vm49_vm1, %v48_v4 }
  0x83   :  { %61 = dma.vmem_to_hbm [thread:$0]  %s57_s20, 128, %s59_s1, [#allocation4]  }
  0x84   :  { %149 = dma.done.wait [#allocation4], 128  }
  0x85   :  { %150 = vsyncadd [#allocation4], 4294967168 }
  0x86   :  { %66 = vsyncpa [#allocation3], 1 }
  0x87   :  { %67 = vsyncpa [#allocation6], 1 }
  0x88   :  { %68 = vsyncpa [#allocation4], 1 }

</bundles_post_ra>
